<compile_context>
chip_gen: v6e
topology: v6e:2x2x1
jax: 0.10.0
libtpu: 0.0.40
codegen_flags: <defaults>
</compile_context>

<pallas_src>
import functools

import jax
import jax.numpy as jnp
from jax.experimental import pallas as pl
from jax.experimental.pallas import tpu as pltpu

NEG_SLOPE = 0.2
BN_EPS = 1e-5
LANE = 128


# ---------------------------------------------------------------------------
# Pallas kernel: fused conv-matmul + bias + (BatchNorm) + (LeakyReLU)
# ---------------------------------------------------------------------------
def _fused_conv_kernel(p_ref, w_ref, b_ref, g_ref, be_ref, o_ref, *,
                       apply_bn, apply_lrelu, m_total):
    """[tm,K](bf16) @ [K,128](bf16) -> f32 acc, then bias/BN/LeakyReLU epilogue."""
    acc = jnp.dot(p_ref[...], w_ref[...], preferred_element_type=jnp.float32)
    acc = acc + b_ref[...]                       # bias broadcast over rows (f32)
    if apply_bn:
        # Batch statistics over all M rows.  Only valid because block == full
        # [M, 128] array (asserted in the wrapper); a tiled M would need a
        # two-phase sum/sumsq reduction.
        inv_m = 1.0 / float(m_total)
        mean = jnp.sum(acc, axis=0, keepdims=True) * inv_m
        d = acc - mean
        var = jnp.sum(d * d, axis=0, keepdims=True) * inv_m
        acc = d * jax.lax.rsqrt(var + BN_EPS) * g_ref[...] + be_ref[...]
    if apply_lrelu:
        acc = jnp.where(acc >= 0.0, acc, NEG_SLOPE * acc)
    o_ref[...] = acc


def _vmem_spec():
    return pl.BlockSpec(memory_space=pltpu.MemorySpace.VMEM)


def _fused_conv_pallas(patches, w_mat, b_row, g_row, be_row, *,
                       apply_bn, apply_lrelu, tm=None):
    M, K = patches.shape
    Cp = w_mat.shape[1]                          # 128 (lane-padded Cout)
    kern = functools.partial(_fused_conv_kernel, apply_bn=apply_bn,
                             apply_lrelu=apply_lrelu, m_total=M)
    out_shape = jax.ShapeDtypeStruct((M, Cp), jnp.float32)

    tiled = (not apply_bn) and (tm is not None) and (M > tm) and (M % tm == 0)
    if not tiled:
        # Whole problem in one VMEM block (tiny at these shapes); required for
        # the BN layers so batch statistics see every row.
        return pl.pallas_call(
            kern,
            out_shape=out_shape,
            in_specs=[_vmem_spec() for _ in range(5)],
            out_specs=_vmem_spec(),
        )(patches, w_mat, b_row, g_row, be_row)

    # Grid over M tiles (auto-pipelined, both TCs usable on v7x).
    return pl.pallas_call(
        kern,
        out_shape=out_shape,
        grid=(M // tm,),
        in_specs=[
            pl.BlockSpec((tm, K), lambda i: (i, 0)),
            pl.BlockSpec((K, Cp), lambda i: (0, 0)),
            pl.BlockSpec((1, Cp), lambda i: (0, 0)),
            pl.BlockSpec((1, Cp), lambda i: (0, 0)),
            pl.BlockSpec((1, Cp), lambda i: (0, 0)),
        ],
        out_specs=pl.BlockSpec((tm, Cp), lambda i: (i, 0)),
        compiler_params=pltpu.CompilerParams(
            dimension_semantics=("parallel",)),
    )(patches, w_mat, b_row, g_row, be_row)


# ---------------------------------------------------------------------------
# JAX glue: lane padding, NHWC im2col, layer wrapper
# ---------------------------------------------------------------------------
def _pad_lanes(a, lane=LANE):
    pad = lane - a.shape[-1]
    if pad <= 0:
        return a
    return jnp.pad(a, [(0, 0)] * (a.ndim - 1) + [(0, pad)])


def _im2col_nhwc(x, k, stride, pad):
    """x: [N,H,W,C] -> ([N*Ho*Wo, k*k*C], Ho, Wo); column order (kh, kw, c)."""
    n, h, w, c = x.shape
    xp = jnp.pad(x, ((0, 0), (pad, pad), (pad, pad), (0, 0)))
    ho = (h + 2 * pad - k) // stride + 1
    wo = (w + 2 * pad - k) // stride + 1
    cols = []
    for i in range(k):
        for j in range(k):
            cols.append(
                xp[:, i:i + (ho - 1) * stride + 1:stride,
                   j:j + (wo - 1) * stride + 1:stride, :])
    patches = jnp.stack(cols, axis=3)            # [N, Ho, Wo, k*k, C]
    return patches.reshape(n * ho * wo, k * k * c), ho, wo


def _conv_layer(x_nhwc, w, b, gamma=None, beta=None, *, stride, pad,
                apply_lrelu, tm=None):
    """x_nhwc: [N,H,W,C'] with C' >= Cin (extra lanes are padding and dropped).

    Returns the layer output as [N, Ho, Wo, 128] (lane-padded, NHWC)."""
    cout, cin, k, _ = w.shape
    n = x_nhwc.shape[0]
    x = x_nhwc[..., :cin]                        # drop lane padding
    patches, ho, wo = _im2col_nhwc(x, k, stride, pad)

    w_mat = _pad_lanes(w.transpose(2, 3, 1, 0).reshape(k * k * cin, cout))
    b_row = _pad_lanes(b.reshape(1, cout))
    apply_bn = gamma is not None
    g_row = _pad_lanes((gamma if apply_bn
                        else jnp.ones((cout,), jnp.float32)).reshape(1, cout))
    be_row = _pad_lanes((beta if apply_bn
                         else jnp.zeros((cout,), jnp.float32)).reshape(1, cout))

    out = _fused_conv_pallas(
        patches.astype(jnp.bfloat16), w_mat.astype(jnp.bfloat16),
        b_row, g_row, be_row,
        apply_bn=apply_bn, apply_lrelu=apply_lrelu, tm=tm)
    return out.reshape(n, ho, wo, LANE)


def discriminator_forward(x_nchw, p):
    x = x_nchw.transpose(0, 2, 3, 1)             # NCHW -> NHWC, once
    h = _conv_layer(x, p["w1"], p["b1"], stride=2, pad=1,
                    apply_lrelu=True, tm=64)
    h = _conv_layer(h, p["w2"], p["b2"], p["g2"], p["be2"], stride=2, pad=1,
                    apply_lrelu=True)
    h = _conv_layer(h, p["w3"], p["b3"], p["g3"], p["be3"], stride=2, pad=1,
                    apply_lrelu=True)
    h = _conv_layer(h, p["w4"], p["b4"], stride=1, pad=1, apply_lrelu=False)
    out = h[..., :1]                             # [N, 1, 1, 1] NHWC
    return out.transpose(0, 3, 1, 2)             # -> NCHW like the nn.Module


# ---------------------------------------------------------------------------
# Pure-JAX reference (same bf16 matmul inputs / f32 accumulation as kernel)
# ---------------------------------------------------------------------------
def ref_forward(x, p):
    def conv(v, w, b, s, pad):
        y = jax.lax.conv_general_dilated(
            v.astype(jnp.bfloat16), w.astype(jnp.bfloat16), (s, s),
            [(pad, pad), (pad, pad)],
            dimension_numbers=("NCHW", "OIHW", "NCHW"),
            preferred_element_type=jnp.float32)
        return y + b[None, :, None, None]

    def lrelu(v):
        return jnp.where(v >= 0, v, NEG_SLOPE * v)

    def bn(v, g, be):
        mean = jnp.mean(v, axis=(0, 2, 3), keepdims=True)
        var = jnp.mean((v - mean) ** 2, axis=(0, 2, 3), keepdims=True)
        return ((v - mean) * jax.lax.rsqrt(var + BN_EPS)
                * g[None, :, None, None] + be[None, :, None, None])

    h = lrelu(conv(x, p["w1"], p["b1"], 2, 1))
    h = lrelu(bn(conv(h, p["w2"], p["b2"], 2, 1), p["g2"], p["be2"]))
    h = lrelu(bn(conv(h, p["w3"], p["b3"], 2, 1), p["g3"], p["be3"]))
    return conv(h, p["w4"], p["b4"], 1, 1)


# ---------------------------------------------------------------------------
def make_params(key, base_channels):
    c = base_channels
    ks = jax.random.split(key, 12)
    f32 = jnp.float32

    def w(k, shape, fan_in):
        return jax.random.normal(k, shape, f32) * (1.0 / jnp.sqrt(fan_in))

    return {
        "w1": w(ks[0], (c, 1, 4, 4), 1 * 16),
        "b1": jax.random.normal(ks[1], (c,), f32) * 0.05,
        "w2": w(ks[2], (2 * c, c, 4, 4), c * 16),
        "b2": jax.random.normal(ks[3], (2 * c,), f32) * 0.05,
        "g2": 1.0 + 0.1 * jax.random.normal(ks[4], (2 * c,), f32),
        "be2": 0.1 * jax.random.normal(ks[5], (2 * c,), f32),
        "w3": w(ks[6], (4 * c, 2 * c, 4, 4), 2 * c * 16),
        "b3": jax.random.normal(ks[7], (4 * c,), f32) * 0.05,
        "g3": 1.0 + 0.1 * jax.random.normal(ks[8], (4 * c,), f32),
        "be3": 0.1 * jax.random.normal(ks[9], (4 * c,), f32),
        "w4": w(ks[10], (1, 4 * c, 4, 4), 4 * c * 16),
        "b4": jax.random.normal(ks[11], (1,), f32) * 0.05,
    }


if __name__ == "__main__":
    key = jax.random.PRNGKey(0)
    k_x, k_p = jax.random.split(key)

    base_channels = 8
    x = jax.random.normal(k_x, (2, 1, 16, 16), jnp.float32)   # N=2, C=1, 16x16
    params = make_params(k_p, base_channels)

    fwd = jax.jit(discriminator_forward)
    out = jax.block_until_ready(fwd(x, params))
    ref = jax.block_until_ready(ref_forward(x, params))

    assert out.shape == (2, 1, 1, 1), out.shape
    assert jnp.allclose(out, ref, rtol=1e-2, atol=1e-2), (
        f"max abs err {jnp.max(jnp.abs(out - ref))}")
    print("KERNEL_OK")
</pallas_src>

<mosaic_0001>
module attributes {stable_mosaic.version = 11 : i64} {
  func.func @_fused_conv_kernel(%arg0: i32, %arg1: memref<64x16xbf16, #tpu.memory_space<vmem>>, %arg2: memref<16x128xbf16, #tpu.memory_space<vmem>>, %arg3: memref<1x128xf32, #tpu.memory_space<vmem>>, %arg4: memref<1x128xf32, #tpu.memory_space<vmem>>, %arg5: memref<1x128xf32, #tpu.memory_space<vmem>>, %arg6: memref<64x128xf32, #tpu.memory_space<vmem>>) attributes {dimension_semantics = [#tpu.dimension_semantics<parallel>], iteration_bounds = array<i64: 2>, scalar_prefetch = 0 : i64, scratch_operands = 0 : i64, tpu.core_type = #tpu.core_type<tc>, window_params = [{transform_indices = @transform_0, window_bounds = array<i64: 64, 16>}, {pipeline_mode = #tpu.pipeline_mode<synchronous>, transform_indices = @transform_1, window_bounds = array<i64: 16, 128>}, {pipeline_mode = #tpu.pipeline_mode<synchronous>, transform_indices = @transform_2, window_bounds = array<i64: 1, 128>}, {pipeline_mode = #tpu.pipeline_mode<synchronous>, transform_indices = @transform_3, window_bounds = array<i64: 1, 128>}, {pipeline_mode = #tpu.pipeline_mode<synchronous>, transform_indices = @transform_4, window_bounds = array<i64: 1, 128>}, {transform_indices = @transform_5, window_bounds = array<i64: 64, 128>}]} {
    %c0 = arith.constant 0 : index
    %c0_0 = arith.constant 0 : index
    %0 = vector.load %arg1[%c0, %c0_0] : memref<64x16xbf16, #tpu.memory_space<vmem>>, vector<64x16xbf16>
    %c0_1 = arith.constant 0 : index
    %c0_2 = arith.constant 0 : index
    %1 = vector.load %arg2[%c0_1, %c0_2] : memref<16x128xbf16, #tpu.memory_space<vmem>>, vector<16x128xbf16>
    %cst = arith.constant dense<0.000000e+00> : vector<64x128xf32>
    %2 = tpu.matmul %0, %1, %cst {dimension_numbers = #tpu.dot_dimension_numbers<[1], [0], [0], [1], [0, 0, 1, 1], [], []>} : vector<64x16xbf16>, vector<16x128xbf16>, vector<64x128xf32> -> vector<64x128xf32>
    %c0_3 = arith.constant 0 : index
    %c0_4 = arith.constant 0 : index
    %3 = vector.load %arg3[%c0_3, %c0_4] : memref<1x128xf32, #tpu.memory_space<vmem>>, vector<1x128xf32>
    %4 = vector.broadcast %3 : vector<1x128xf32> to vector<64x128xf32>
    %5 = arith.addf %2, %4 : vector<64x128xf32>
    %cst_5 = arith.constant 0.000000e+00 : f32
    %6 = vector.broadcast %cst_5 : f32 to vector<64x128xf32>
    %7 = arith.cmpf oge, %5, %6 : vector<64x128xf32>
    %cst_6 = arith.constant 2.000000e-01 : f32
    %8 = vector.broadcast %cst_6 : f32 to vector<64x128xf32>
    %9 = arith.mulf %8, %5 : vector<64x128xf32>
    %10 = arith.select %7, %5, %9 : vector<64x128xi1>, vector<64x128xf32>
    %c0_7 = arith.constant 0 : index
    %c0_8 = arith.constant 0 : index
    %11 = vector.load %arg6[%c0_7, %c0_8] : memref<64x128xf32, #tpu.memory_space<vmem>>, vector<64x128xf32>
    tpu.vector_store %arg6[%c0_7, %c0_8], %10 {strides = array<i32>} : memref<64x128xf32, #tpu.memory_space<vmem>>, vector<64x128xf32>,
    return
  }
  func.func @transform_0(%arg0: i32) -> (i32, i32) {
    %c0_i32 = arith.constant 0 : i32
    %c0_i32_0 = arith.constant 0 : i32
    return %arg0, %c0_i32 : i32, i32
  }
  func.func @transform_1(%arg0: i32) -> (i32, i32) {
    %c0_i32 = arith.constant 0 : i32
    %c0_i32_0 = arith.constant 0 : i32
    %c0_i32_1 = arith.constant 0 : i32
    return %c0_i32, %c0_i32_0 : i32, i32
  }
  func.func @transform_2(%arg0: i32) -> (i32, i32) {
    %c0_i32 = arith.constant 0 : i32
    %c0_i32_0 = arith.constant 0 : i32
    %c0_i32_1 = arith.constant 0 : i32
    return %c0_i32, %c0_i32_0 : i32, i32
  }
  func.func @transform_3(%arg0: i32) -> (i32, i32) {
    %c0_i32 = arith.constant 0 : i32
    %c0_i32_0 = arith.constant 0 : i32
    %c0_i32_1 = arith.constant 0 : i32
    return %c0_i32, %c0_i32_0 : i32, i32
  }
  func.func @transform_4(%arg0: i32) -> (i32, i32) {
    %c0_i32 = arith.constant 0 : i32
    %c0_i32_0 = arith.constant 0 : i32
    %c0_i32_1 = arith.constant 0 : i32
    return %c0_i32, %c0_i32_0 : i32, i32
  }
  func.func @transform_5(%arg0: i32) -> (i32, i32) {
    %c0_i32 = arith.constant 0 : i32
    %c0_i32_0 = arith.constant 0 : i32
    return %arg0, %c0_i32 : i32, i32
  }
}

module attributes {stable_mosaic.version = 11 : i64} {
  func.func @_fused_conv_kernel(%arg0: memref<32x128xbf16, #tpu.memory_space<vmem>>, %arg1: memref<128x128xbf16, #tpu.memory_space<vmem>>, %arg2: memref<1x128xf32, #tpu.memory_space<vmem>>, %arg3: memref<1x128xf32, #tpu.memory_space<vmem>>, %arg4: memref<1x128xf32, #tpu.memory_space<vmem>>, %arg5: memref<32x128xf32, #tpu.memory_space<vmem>>) attributes {dimension_semantics = [], scalar_prefetch = 0 : i64, scratch_operands = 0 : i64, tpu.core_type = #tpu.core_type<tc>} {
    %c0 = arith.constant 0 : index
    %c0_0 = arith.constant 0 : index
    %0 = vector.load %arg0[%c0, %c0_0] : memref<32x128xbf16, #tpu.memory_space<vmem>>, vector<32x128xbf16>
    %c0_1 = arith.constant 0 : index
    %c0_2 = arith.constant 0 : index
    %1 = vector.load %arg1[%c0_1, %c0_2] : memref<128x128xbf16, #tpu.memory_space<vmem>>, vector<128x128xbf16>
    %cst = arith.constant dense<0.000000e+00> : vector<32x128xf32>
    %2 = tpu.matmul %0, %1, %cst {dimension_numbers = #tpu.dot_dimension_numbers<[1], [0], [0], [1], [0, 0, 1, 1], [], []>} : vector<32x128xbf16>, vector<128x128xbf16>, vector<32x128xf32> -> vector<32x128xf32>
    %c0_3 = arith.constant 0 : index
    %c0_4 = arith.constant 0 : index
    %3 = vector.load %arg2[%c0_3, %c0_4] : memref<1x128xf32, #tpu.memory_space<vmem>>, vector<1x128xf32>
    %4 = vector.broadcast %3 : vector<1x128xf32> to vector<32x128xf32>
    %5 = arith.addf %2, %4 : vector<32x128xf32>
    %cst_5 = arith.constant dense<0.000000e+00> : vector<128xf32>
    %6 = vector.multi_reduction <add>, %5, %cst_5 [0] : vector<32x128xf32> to vector<128xf32>
    %7 = vector.shape_cast %6 : vector<128xf32> to vector<1x128xf32>
    %cst_6 = arith.constant 3.125000e-02 : f32
    %8 = vector.broadcast %cst_6 : f32 to vector<1x128xf32>
    %9 = arith.mulf %7, %8 : vector<1x128xf32>
    %10 = vector.broadcast %9 : vector<1x128xf32> to vector<32x128xf32>
    %11 = arith.subf %5, %10 : vector<32x128xf32>
    %12 = arith.mulf %11, %11 : vector<32x128xf32>
    %cst_7 = arith.constant dense<0.000000e+00> : vector<128xf32>
    %13 = vector.multi_reduction <add>, %12, %cst_7 [0] : vector<32x128xf32> to vector<128xf32>
    %14 = vector.shape_cast %13 : vector<128xf32> to vector<1x128xf32>
    %cst_8 = arith.constant 3.125000e-02 : f32
    %15 = vector.broadcast %cst_8 : f32 to vector<1x128xf32>
    %16 = arith.mulf %14, %15 : vector<1x128xf32>
    %cst_9 = arith.constant 9.99999974E-6 : f32
    %17 = vector.broadcast %cst_9 : f32 to vector<1x128xf32>
    %18 = arith.addf %16, %17 : vector<1x128xf32>
    %19 = math.rsqrt %18 : vector<1x128xf32>
    %20 = vector.broadcast %19 : vector<1x128xf32> to vector<32x128xf32>
    %21 = arith.mulf %11, %20 : vector<32x128xf32>
    %c0_10 = arith.constant 0 : index
    %c0_11 = arith.constant 0 : index
    %22 = vector.load %arg3[%c0_10, %c0_11] : memref<1x128xf32, #tpu.memory_space<vmem>>, vector<1x128xf32>
    %23 = vector.broadcast %22 : vector<1x128xf32> to vector<32x128xf32>
    %24 = arith.mulf %21, %23 : vector<32x128xf32>
    %c0_12 = arith.constant 0 : index
    %c0_13 = arith.constant 0 : index
    %25 = vector.load %arg4[%c0_12, %c0_13] : memref<1x128xf32, #tpu.memory_space<vmem>>, vector<1x128xf32>
    %26 = vector.broadcast %25 : vector<1x128xf32> to vector<32x128xf32>
    %27 = arith.addf %24, %26 : vector<32x128xf32>
    %cst_14 = arith.constant 0.000000e+00 : f32
    %28 = vector.broadcast %cst_14 : f32 to vector<32x128xf32>
    %29 = arith.cmpf oge, %27, %28 : vector<32x128xf32>
    %cst_15 = arith.constant 2.000000e-01 : f32
    %30 = vector.broadcast %cst_15 : f32 to vector<32x128xf32>
    %31 = arith.mulf %30, %27 : vector<32x128xf32>
    %32 = arith.select %29, %27, %31 : vector<32x128xi1>, vector<32x128xf32>
    %c0_16 = arith.constant 0 : index
    %c0_17 = arith.constant 0 : index
    %33 = vector.load %arg5[%c0_16, %c0_17] : memref<32x128xf32, #tpu.memory_space<vmem>>, vector<32x128xf32>
    tpu.vector_store %arg5[%c0_16, %c0_17], %32 {strides = array<i32>} : memref<32x128xf32, #tpu.memory_space<vmem>>, vector<32x128xf32>,
    return
  }
}

module attributes {stable_mosaic.version = 11 : i64} {
  func.func @_fused_conv_kernel(%arg0: memref<8x256xbf16, #tpu.memory_space<vmem>>, %arg1: memref<256x128xbf16, #tpu.memory_space<vmem>>, %arg2: memref<1x128xf32, #tpu.memory_space<vmem>>, %arg3: memref<1x128xf32, #tpu.memory_space<vmem>>, %arg4: memref<1x128xf32, #tpu.memory_space<vmem>>, %arg5: memref<8x128xf32, #tpu.memory_space<vmem>>) attributes {dimension_semantics = [], scalar_prefetch = 0 : i64, scratch_operands = 0 : i64, tpu.core_type = #tpu.core_type<tc>} {
    %c0 = arith.constant 0 : index
    %c0_0 = arith.constant 0 : index
    %0 = vector.load %arg0[%c0, %c0_0] : memref<8x256xbf16, #tpu.memory_space<vmem>>, vector<8x256xbf16>
    %c0_1 = arith.constant 0 : index
    %c0_2 = arith.constant 0 : index
    %1 = vector.load %arg1[%c0_1, %c0_2] : memref<256x128xbf16, #tpu.memory_space<vmem>>, vector<256x128xbf16>
    %cst = arith.constant dense<0.000000e+00> : vector<8x128xf32>
    %2 = tpu.matmul %0, %1, %cst {dimension_numbers = #tpu.dot_dimension_numbers<[1], [0], [0], [1], [0, 0, 1, 1], [], []>} : vector<8x256xbf16>, vector<256x128xbf16>, vector<8x128xf32> -> vector<8x128xf32>
    %c0_3 = arith.constant 0 : index
    %c0_4 = arith.constant 0 : index
    %3 = vector.load %arg2[%c0_3, %c0_4] : memref<1x128xf32, #tpu.memory_space<vmem>>, vector<1x128xf32>
    %4 = vector.broadcast %3 : vector<1x128xf32> to vector<8x128xf32>
    %5 = arith.addf %2, %4 : vector<8x128xf32>
    %cst_5 = arith.constant dense<0.000000e+00> : vector<128xf32>
    %6 = vector.multi_reduction <add>, %5, %cst_5 [0] : vector<8x128xf32> to vector<128xf32>
    %7 = vector.shape_cast %6 : vector<128xf32> to vector<1x128xf32>
    %cst_6 = arith.constant 1.250000e-01 : f32
    %8 = vector.broadcast %cst_6 : f32 to vector<1x128xf32>
    %9 = arith.mulf %7, %8 : vector<1x128xf32>
    %10 = vector.broadcast %9 : vector<1x128xf32> to vector<8x128xf32>
    %11 = arith.subf %5, %10 : vector<8x128xf32>
    %12 = arith.mulf %11, %11 : vector<8x128xf32>
    %cst_7 = arith.constant dense<0.000000e+00> : vector<128xf32>
    %13 = vector.multi_reduction <add>, %12, %cst_7 [0] : vector<8x128xf32> to vector<128xf32>
    %14 = vector.shape_cast %13 : vector<128xf32> to vector<1x128xf32>
    %cst_8 = arith.constant 1.250000e-01 : f32
    %15 = vector.broadcast %cst_8 : f32 to vector<1x128xf32>
    %16 = arith.mulf %14, %15 : vector<1x128xf32>
    %cst_9 = arith.constant 9.99999974E-6 : f32
    %17 = vector.broadcast %cst_9 : f32 to vector<1x128xf32>
    %18 = arith.addf %16, %17 : vector<1x128xf32>
    %19 = math.rsqrt %18 : vector<1x128xf32>
    %20 = vector.broadcast %19 : vector<1x128xf32> to vector<8x128xf32>
    %21 = arith.mulf %11, %20 : vector<8x128xf32>
    %c0_10 = arith.constant 0 : index
    %c0_11 = arith.constant 0 : index
    %22 = vector.load %arg3[%c0_10, %c0_11] : memref<1x128xf32, #tpu.memory_space<vmem>>, vector<1x128xf32>
    %23 = vector.broadcast %22 : vector<1x128xf32> to vector<8x128xf32>
    %24 = arith.mulf %21, %23 : vector<8x128xf32>
    %c0_12 = arith.constant 0 : index
    %c0_13 = arith.constant 0 : index
    %25 = vector.load %arg4[%c0_12, %c0_13] : memref<1x128xf32, #tpu.memory_space<vmem>>, vector<1x128xf32>
    %26 = vector.broadcast %25 : vector<1x128xf32> to vector<8x128xf32>
    %27 = arith.addf %24, %26 : vector<8x128xf32>
    %cst_14 = arith.constant 0.000000e+00 : f32
    %28 = vector.broadcast %cst_14 : f32 to vector<8x128xf32>
    %29 = arith.cmpf oge, %27, %28 : vector<8x128xf32>
    %cst_15 = arith.constant 2.000000e-01 : f32
    %30 = vector.broadcast %cst_15 : f32 to vector<8x128xf32>
    %31 = arith.mulf %30, %27 : vector<8x128xf32>
    %32 = arith.select %29, %27, %31 : vector<8x128xi1>, vector<8x128xf32>
    %c0_16 = arith.constant 0 : index
    %c0_17 = arith.constant 0 : index
    %33 = vector.load %arg5[%c0_16, %c0_17] : memref<8x128xf32, #tpu.memory_space<vmem>>, vector<8x128xf32>
    tpu.vector_store %arg5[%c0_16, %c0_17], %32 {strides = array<i32>} : memref<8x128xf32, #tpu.memory_space<vmem>>, vector<8x128xf32>,
    return
  }
}

module attributes {stable_mosaic.version = 11 : i64} {
  func.func @_fused_conv_kernel(%arg0: memref<2x512xbf16, #tpu.memory_space<vmem>>, %arg1: memref<512x128xbf16, #tpu.memory_space<vmem>>, %arg2: memref<1x128xf32, #tpu.memory_space<vmem>>, %arg3: memref<1x128xf32, #tpu.memory_space<vmem>>, %arg4: memref<1x128xf32, #tpu.memory_space<vmem>>, %arg5: memref<2x128xf32, #tpu.memory_space<vmem>>) attributes {dimension_semantics = [], scalar_prefetch = 0 : i64, scratch_operands = 0 : i64, tpu.core_type = #tpu.core_type<tc>} {
    %c0 = arith.constant 0 : index
    %c0_0 = arith.constant 0 : index
    %0 = vector.load %arg0[%c0, %c0_0] : memref<2x512xbf16, #tpu.memory_space<vmem>>, vector<2x512xbf16>
    %c0_1 = arith.constant 0 : index
    %c0_2 = arith.constant 0 : index
    %1 = vector.load %arg1[%c0_1, %c0_2] : memref<512x128xbf16, #tpu.memory_space<vmem>>, vector<512x128xbf16>
    %cst = arith.constant dense<0.000000e+00> : vector<2x128xf32>
    %2 = tpu.matmul %0, %1, %cst {dimension_numbers = #tpu.dot_dimension_numbers<[1], [0], [0], [1], [0, 0, 1, 1], [], []>} : vector<2x512xbf16>, vector<512x128xbf16>, vector<2x128xf32> -> vector<2x128xf32>
    %c0_3 = arith.constant 0 : index
    %c0_4 = arith.constant 0 : index
    %3 = vector.load %arg2[%c0_3, %c0_4] : memref<1x128xf32, #tpu.memory_space<vmem>>, vector<1x128xf32>
    %4 = vector.broadcast %3 : vector<1x128xf32> to vector<2x128xf32>
    %5 = arith.addf %2, %4 : vector<2x128xf32>
    %c0_5 = arith.constant 0 : index
    %c0_6 = arith.constant 0 : index
    %6 = vector.load %arg5[%c0_5, %c0_6] : memref<2x128xf32, #tpu.memory_space<vmem>>, vector<2x128xf32>
    tpu.vector_store %arg5[%c0_5, %c0_6], %5 {strides = array<i32>} : memref<2x128xf32, #tpu.memory_space<vmem>>, vector<2x128xf32>,
    return
  }
}

</mosaic_0001>

<bundles_post_ra>
// kernel: discriminator_forward.4
= control target key start
LH: loop header
LB: loop body
LE: loop exit
PB: predicated region body
PF: predicated region fallthrough
CT: control target
= control target key end

     0   :  { %s527_s18 = smov 0   ;;  %s560_s0 = inlined_call_operand.vmem [shape: bf16[128,16], index: 0, kind: input, shape index: {}]   ;;  %s561_s1 = inlined_call_operand.vmem [shape: bf16[16,128], index: 1, kind: input, shape index: {}]   ;;  %s562_s2 = inlined_call_operand.vmem [shape: f32[1,128], index: 2, kind: input, shape index: {}]   ;;  %s563_s3 = inlined_call_operand.vmem [shape: f32[1,128], index: 3, kind: input, shape index: {}]   ;;  %s564_s4 = inlined_call_operand.vmem [shape: f32[1,128], index: 4, kind: input, shape index: {}]   ;;  %s565_s5 = inlined_call_operand.vmem [shape: f32[128,128], index: 5, kind: output, shape index: {}]  }
   0x1 LB: > { %s438_s19 = sadd.s32 4294967295, %s495_s18   ;;  %p442_p0 = scmp.ge.s32.totalorder %s495_s18, 1  ;;  %s495_s18 = sphi %s527_s18, %s15_s18  }
   0x2   : > { %p188_p1 = scmp.lt.s32.totalorder %s495_s18, 3 }
   0x4   : > { %p189_p2 = pnand %p442_p0, %p188_p1 }
   0x5   : > { %s443_s20 = sshll.u32 (!%p189_p2), %s438_s19, 3 }
   0x6   : > { %192 = sbr.rel (%p189_p2) target bundleno = 222 (0xde), region = 40  ;;  %p217_p3 = scmp.lt.s32.totalorder (!%p189_p2), %s443_s20, 15 }
   0xb   : > { %v484_v0 = vld [vmem:[%s561_s1] sm:$0xff]   ;;  %s567_s20 = smov (!%p217_p3, %s443_s20), 15  ;;  %vm272_vm0 = vcmask 130048  }
   0xc   : > { %464 = vmatprep.subr.bf16.mxu0 %v484_v0  ;;  %474 = vmatprep.subr.bf16.mxu1 %v484_v0  ;;  %s444_s21 = sshll.u32 %s567_s20, 2  ;;  %v447_v5 = vld [vmem:[%s562_s2] ss:$0 sm:$0xff]  ;;  %s446_s27 = sshll.u32 %s567_s20, 3 }
   0xd   : > { %465 = vmatpush3.bf16.msra.mxu0 %v484_v0  ;;  %475 = vmatpush3.bf16.msra.mxu1 %v484_v0  ;;  %s220_s24 = scalar_lea.vmem %s560_s0, %s444_s21  ;;  %s547_s30 = scalar_lea.vmem %s565_s5, %s446_s27 }
   0xe   : > { %v485_v1 = vld [vmem:[%s220_s24] sm:$0xff]   ;;  %v486_v2 = vld [vmem:[%s220_s24 + $0x10] sm:$0xff]   ;;  %v487_v3 = vld [vmem:[%s220_s24 + $0x8] sm:$0xff]  }
   0xf   : > { %466 = vmatprep.mubr.msk.bf16.mxu0 %vm272_vm0, %v485_v1  ;;  %470 = vmatprep.mubr.msk.bf16.mxu1 %vm272_vm0, %v486_v2  ;;  %v488_v4 = vld [vmem:[%s220_s24 + $0x18] sm:$0xff]  }
  0x10   : > { %467 = vmatmul.mubr.msk.bf16.vlgmr.msra.gmra.mxu0 %vm272_vm0, %v487_v3  ;;  %471 = vmatmul.mubr.msk.bf16.vlgmr.msra.gmra.mxu1 %vm272_vm0, %v488_v4 }
  0xd0   : > { %v468_v6 = vpop.f32.mrf.mxu0  ;;  %v472_v8 = vpop.f32.mrf.mxu1 }
  0xd1   : > { %v328_v7 = vadd.f32 %v468_v6, %v447_v5  ;;  %v344_v9 = vadd.f32 %v472_v8, %v447_v5 }
  0xd2   : > { %v319_v10 = vpop.f32.mrf.mxu0  ;;  %v335_v13 = vpop.f32.mrf.mxu1 }
  0xd3   : > { %vm352_vm1 = vcmp.ge.f32.partialorder %v328_v7, 0.0  ;;  %v360_v11 = vmul.f32 0.2, %v328_v7  ;;  %v320_v12 = vadd.f32 %v447_v5, %v319_v10  ;;  %vm356_vm2 = vcmp.ge.f32.partialorder %v344_v9, 0.0 }
  0xd4   : > { %v364_v14 = vmul.f32 0.2, %v344_v9  ;;  %v336_v15 = vadd.f32 %v447_v5, %v335_v13  ;;  %v469_v16 = vpop.f32.mrf.mxu0  ;;  %v473_v20 = vpop.f32.mrf.mxu1 }
  0xd5   : > { %v368_v17 = vsel %vm352_vm1, %v328_v7, %v360_v11  ;;  %vm350_vm3 = vcmp.ge.f32.partialorder %v320_v12, 0.0  ;;  %v358_v18 = vmul.f32 0.2, %v320_v12  ;;  %v331_v19 = vadd.f32 %v469_v16, %v447_v5 }
  0xd6   : > { %376 = vst [vmem:[%s547_s30 + $0x10] sm:$0xff] %v368_v17  ;;  %v372_v21 = vsel %vm356_vm2, %v344_v9, %v364_v14  ;;  %vm354_vm4 = vcmp.ge.f32.partialorder %v336_v15, 0.0  ;;  %v362_v22 = vmul.f32 0.2, %v336_v15  ;;  %v347_v23 = vadd.f32 %v473_v20, %v447_v5  ;;  %v322_v24 = vpop.f32.mrf.mxu0  ;;  %v338_v28 = vpop.f32.mrf.mxu1 }
  0xd7   : > { %380 = vst [vmem:[%s547_s30 + $0x30] sm:$0xff] %v372_v21  ;;  %v366_v25 = vsel %vm350_vm3, %v320_v12, %v358_v18  ;;  %vm353_vm5 = vcmp.ge.f32.partialorder %v331_v19, 0.0  ;;  %v361_v26 = vmul.f32 0.2, %v331_v19  ;;  %v323_v27 = vadd.f32 %v447_v5, %v322_v24 }
  0xd8   : > { %374 = vst [vmem:[%s547_s30] sm:$0xff] %v366_v25  ;;  %v370_v29 = vsel %vm354_vm4, %v336_v15, %v362_v22  ;;  %vm357_vm6 = vcmp.ge.f32.partialorder %v347_v23, 0.0  ;;  %v365_v30 = vmul.f32 0.2, %v347_v23  ;;  %v339_v31 = vadd.f32 %v447_v5, %v338_v28 }
  0xd9   : > { %378 = vst [vmem:[%s547_s30 + $0x20] sm:$0xff] %v370_v29  ;;  %v369_v32 = vsel %vm353_vm5, %v331_v19, %v361_v26  ;;  %vm351_vm7 = vcmp.ge.f32.partialorder %v323_v27, 0.0  ;;  %v359_v33 = vmul.f32 0.2, %v323_v27 }
  0xda   : > { %377 = vst [vmem:[%s547_s30 + $0x18] sm:$0xff] %v369_v32  ;;  %v373_v34 = vsel %vm357_vm6, %v347_v23, %v365_v30  ;;  %vm355_vm8 = vcmp.ge.f32.partialorder %v339_v31, 0.0  ;;  %v363_v35 = vmul.f32 0.2, %v339_v31 }
  0xdb   : > { %381 = vst [vmem:[%s547_s30 + $0x38] sm:$0xff] %v373_v34  ;;  %v367_v36 = vsel %vm351_vm7, %v323_v27, %v359_v33 }
  0xdc   : > { %375 = vst [vmem:[%s547_s30 + $0x8] sm:$0xff] %v367_v36  ;;  %v371_v37 = vsel %vm355_vm8, %v339_v31, %v363_v35 }
  0xdd   : > { %379 = vst [vmem:[%s547_s30 + $0x28] sm:$0xff] %v371_v37 }
  0xde PF: > { %s15_s18 = sadd.s32 1, %s495_s18  }
  0xdf   : > { %p12_p4 = scmp.ge.s32.totalorder %s15_s18, 4  }
  0xe1   :  { %14 = sbr.rel (!%p12_p4) target bundleno = 1 (0x1), region = 70 }

// kernel: discriminator_forward.5
= control target key start
LH: loop header
LB: loop body
LE: loop exit
PB: predicated region body
PF: predicated region fallthrough
CT: control target
= control target key end

     0   :  { %s369_s1 = inlined_call_operand.vmem [shape: bf16[128,128], index: 1, kind: input, shape index: {}]   ;;  %s370_s0 = inlined_call_operand.vmem [shape: bf16[32,128], index: 0, kind: input, shape index: {}]   ;;  %s371_s2 = inlined_call_operand.vmem [shape: f32[1,128], index: 2, kind: input, shape index: {}]   ;;  %s372_s3 = inlined_call_operand.vmem [shape: f32[1,128], index: 3, kind: input, shape index: {}]   ;;  %s373_s4 = inlined_call_operand.vmem [shape: f32[1,128], index: 4, kind: input, shape index: {}]   ;;  %s374_s5 = inlined_call_operand.vmem [shape: f32[32,128], index: 5, kind: output, shape index: {}]  }
   0x1   :  { %v276_v0 = vld [vmem:[%s369_s1 + $0x38] sm:$0xff]   ;;  %v277_v1 = vld [vmem:[%s369_s1 + $0x30] sm:$0xff]   ;;  %v278_v2 = vld [vmem:[%s369_s1 + $0x28] sm:$0xff]  }
   0x2   :  { %256 = vmatprep.subr.bf16.mxu0 %v276_v0  ;;  %v279_v3 = vld [vmem:[%s369_s1 + $0x20] sm:$0xff]   ;;  %v280_v5 = vld [vmem:[%s369_s1 + $0x18] sm:$0xff]   ;;  %v281_v6 = vld [vmem:[%s369_s1 + $0x10] sm:$0xff]  }
   0x3   :  { %257 = vmatpush3.bf16.msra.mxu0 %v276_v0  ;;  %v284_v4 = vld [vmem:[%s370_s0] sm:$0xff]   ;;  %v282_v7 = vld [vmem:[%s369_s1 + $0x8] sm:$0xff]  }
   0x4   :  { %258 = vmatprep.subr.bf16.mxu0 %v277_v1  ;;  %272 = vmatprep.mubr.bf16.mxu0 %v284_v4  ;;  %v283_v8 = vld [vmem:[%s369_s1] sm:$0xff]   ;;  %v285_v9 = vld [vmem:[%s370_s0 + $0x8] sm:$0xff]  }
   0x5   :  { %v233_v13 = vld [vmem:[%s371_s2] ss:$0 sm:$0xff] }
   0x6   :  { %v244_v49 = vld [vmem:[%s372_s3] ss:$0 sm:$0xff] }
   0x7   :  { %259 = vmatpush3.bf16.msra.mxu0 %v277_v1  ;;  %v245_v54 = vld [vmem:[%s373_s4] ss:$0 sm:$0xff] }
   0x8   :  { %260 = vmatprep.subr.bf16.mxu0 %v278_v2 }
   0xb   :  { %261 = vmatpush3.bf16.msra.mxu0 %v278_v2 }
   0xc   :  { %262 = vmatprep.subr.bf16.mxu0 %v279_v3 }
   0xf   :  { %263 = vmatpush3.bf16.msra.mxu0 %v279_v3 }
  0x10   :  { %264 = vmatprep.subr.bf16.mxu0 %v280_v5 }
  0x13   :  { %265 = vmatpush3.bf16.msra.mxu0 %v280_v5 }
  0x14   :  { %266 = vmatprep.subr.bf16.mxu0 %v281_v6 }
  0x17   :  { %267 = vmatpush3.bf16.msra.mxu0 %v281_v6 }
  0x18   :  { %268 = vmatprep.subr.bf16.mxu0 %v282_v7 }
  0x1b   :  { %269 = vmatpush3.bf16.msra.mxu0 %v282_v7 }
  0x1c   :  { %270 = vmatprep.subr.bf16.mxu0 %v283_v8 }
  0x1f   :  { %271 = vmatpush3.bf16.msra.mxu0 %v283_v8 }
  0x22   :  { %273 = vmatmul.mubr.bf16.vlgmr.msra.gmra.mxu0 %v285_v9 }
  0xe2   :  { %v274_v10 = vpop.f32.mrf.mxu0 }
  0xe3   :  { %v151_v17 = vadd.f32 %v274_v10, %v233_v13 }
  0xe4   :  { %v142_v11 = vpop.f32.mrf.mxu0 }
  0xe5   :  { %v143_v15 = vadd.f32 %v233_v13, %v142_v11 }
  0xe6   :  { %v275_v12 = vpop.f32.mrf.mxu0 }
  0xe7   :  { %v154_v19 = vadd.f32 %v275_v12, %v233_v13 }
  0xe8   :  { %v145_v14 = vpop.f32.mrf.mxu0 }
  0xe9   :  { %v146_v16 = vadd.f32 %v233_v13, %v145_v14 }
  0xeb   :  { %v157_v18 = vadd.f32 %v146_v16, %v143_v15 }
  0xed   :  { %v158_v20 = vadd.f32 %v157_v18, %v151_v17 }
  0xef   :  { %v159_v21 = vadd.f32 %v158_v20, %v154_v19 }
  0xf1   :  { %v160_v22 = vrot.slane %v159_v21, 4 }
  0xf3   :  { %v161_v23 = vadd.f32 %v160_v22, %v159_v21 }
  0xf5   :  { %v162_v24 = vrot.slane %v161_v23, 2 }
  0xf7   :  { %v163_v25 = vadd.f32 %v162_v24, %v161_v23 }
  0xf9   :  { %v164_v26 = vrot.slane %v163_v25, 1 }
  0xfb   :  { %v165_v27 = vadd.f32 %v164_v26, %v163_v25 }
  0xfd   :  { %v166_v28 = vmul.f32 0.03125, %v165_v27 }
  0xff   :  { %v167_v29 = vsub.f32 %v143_v15, %v166_v28  ;;  %v168_v30 = vsub.f32 %v146_v16, %v166_v28  ;;  %v169_v31 = vsub.f32 %v151_v17, %v166_v28  ;;  %v170_v32 = vsub.f32 %v154_v19, %v166_v28 }
 0x101   :  { %v171_v33 = vmul.f32 %v167_v29, %v167_v29  ;;  %v172_v34 = vmul.f32 %v168_v30, %v168_v30  ;;  %v173_v35 = vmul.f32 %v169_v31, %v169_v31  ;;  %v174_v37 = vmul.f32 %v170_v32, %v170_v32 }
 0x103   :  { %v175_v36 = vadd.f32 %v172_v34, %v171_v33 }
 0x105   :  { %v176_v38 = vadd.f32 %v175_v36, %v173_v35 }
 0x107   :  { %v177_v39 = vadd.f32 %v176_v38, %v174_v37 }
 0x109   :  { %v178_v40 = vrot.slane %v177_v39, 4 }
 0x10b   :  { %v179_v41 = vadd.f32 %v178_v40, %v177_v39 }
 0x10d   :  { %v180_v42 = vrot.slane %v179_v41, 2 }
 0x10f   :  { %v181_v43 = vadd.f32 %v180_v42, %v179_v41 }
 0x111   :  { %v182_v44 = vrot.slane %v181_v43, 1 }
 0x113   :  { %v183_v45 = vadd.f32 %v182_v44, %v181_v43 }
 0x115   :  { %v184_v46 = vmul.f32 0.03125, %v183_v45 }
 0x117   :  { %v185_v47 = vadd.f32 1e-05, %v184_v46 }
 0x119   :  { %286 = vrsqrt.f32 %v185_v47 }
 0x126   :  { %v287_v48 = vpop.eup %286 }
 0x127   :  { %v187_v50 = vmul.f32 %v287_v48, %v167_v29  ;;  %v188_v51 = vmul.f32 %v287_v48, %v168_v30  ;;  %v189_v52 = vmul.f32 %v287_v48, %v169_v31  ;;  %v190_v53 = vmul.f32 %v287_v48, %v170_v32 }
 0x129   :  { %v198_v55 = vmul.f32 %v244_v49, %v187_v50  ;;  %v199_v56 = vmul.f32 %v244_v49, %v188_v51  ;;  %v200_v57 = vmul.f32 %v244_v49, %v189_v52  ;;  %v201_v58 = vmul.f32 %v244_v49, %v190_v53 }
 0x12b   :  { %v209_v59 = vadd.f32 %v245_v54, %v198_v55  ;;  %v210_v60 = vadd.f32 %v245_v54, %v199_v56  ;;  %v211_v61 = vadd.f32 %v245_v54, %v200_v57  ;;  %v212_v62 = vadd.f32 %v245_v54, %v201_v58 }
 0x12d   :  { %vm213_vm0 = vcmp.ge.f32.partialorder %v209_v59, 0.0  ;;  %vm214_vm1 = vcmp.ge.f32.partialorder %v210_v60, 0.0  ;;  %vm215_vm2 = vcmp.ge.f32.partialorder %v211_v61, 0.0  ;;  %vm216_vm3 = vcmp.ge.f32.partialorder %v212_v62, 0.0 }
 0x12e   :  { %v217_v63 = vmul.f32 0.2, %v209_v59  ;;  %v218_v0 = vmul.f32 0.2, %v210_v60  ;;  %v219_v1 = vmul.f32 0.2, %v211_v61 }
 0x12f   :  { %v220_v2 = vmul.f32 0.2, %v212_v62 }
 0x130   :  { %v221_v3 = vsel %vm213_vm0, %v209_v59, %v217_v63  ;;  %v222_v4 = vsel %vm214_vm1, %v210_v60, %v218_v0  ;;  %v223_v5 = vsel %vm215_vm2, %v211_v61, %v219_v1 }
 0x131   :  { %v224_v6 = vsel %vm216_vm3, %v212_v62, %v220_v2  ;;  %225 = vst [vmem:[%s374_s5] sm:$0xff] %v221_v3  ;;  %226 = vst [vmem:[%s374_s5 + $0x8] sm:$0xff] %v222_v4 }
 0x132   :  { %227 = vst [vmem:[%s374_s5 + $0x10] sm:$0xff] %v223_v5  ;;  %228 = vst [vmem:[%s374_s5 + $0x18] sm:$0xff] %v224_v6 }

// kernel: discriminator_forward.6
= control target key start
LH: loop header
LB: loop body
LE: loop exit
PB: predicated region body
PF: predicated region fallthrough
CT: control target
= control target key end

     0   :  { %s403_s1 = inlined_call_operand.vmem [shape: bf16[256,128], index: 1, kind: input, shape index: {}]   ;;  %s404_s0 = inlined_call_operand.vmem [shape: bf16[8,256], index: 0, kind: input, shape index: {}]   ;;  %s405_s2 = inlined_call_operand.vmem [shape: f32[1,128], index: 2, kind: input, shape index: {}]   ;;  %s406_s3 = inlined_call_operand.vmem [shape: f32[1,128], index: 3, kind: input, shape index: {}]   ;;  %s407_s4 = inlined_call_operand.vmem [shape: f32[1,128], index: 4, kind: input, shape index: {}]   ;;  %s408_s5 = inlined_call_operand.vmem [shape: f32[8,128], index: 5, kind: output, shape index: {}]  }
   0x1   :  { %v290_v0 = vld [vmem:[%s403_s1 + $0x78] sm:$0xff]   ;;  %v292_v2 = vld [vmem:[%s403_s1 + $0x70] sm:$0xff]   ;;  %v294_v4 = vld [vmem:[%s403_s1 + $0x68] sm:$0xff]  }
   0x2   :  { %v291_v1 = vld [vmem:[%s403_s1 + $0x38] sm:$0xff]   ;;  %268 = vmatprep.subr.bf16.mxu0 %v290_v0  ;;  %v293_v3 = vld [vmem:[%s403_s1 + $0x30] sm:$0xff]   ;;  %v295_v5 = vld [vmem:[%s403_s1 + $0x28] sm:$0xff]  }
   0x3   :  { %269 = vmatpush3.bf16.msra.mxu0 %v291_v1  ;;  %v296_v6 = vld [vmem:[%s403_s1 + $0x60] sm:$0xff]   ;;  %v298_v8 = vld [vmem:[%s403_s1 + $0x58] sm:$0xff]   ;;  %v300_v10 = vld [vmem:[%s403_s1 + $0x50] sm:$0xff]  }
   0x4   :  { %270 = vmatprep.subr.bf16.mxu0 %v292_v2  ;;  %v297_v7 = vld [vmem:[%s403_s1 + $0x20] sm:$0xff]   ;;  %v299_v9 = vld [vmem:[%s403_s1 + $0x18] sm:$0xff]   ;;  %v301_v13 = vld [vmem:[%s403_s1 + $0x10] sm:$0xff]  }
   0x5   :  { %v21_v11 = vld [vmem:[%s404_s0] sm:$0xff]  ;;  %v302_v14 = vld [vmem:[%s403_s1 + $0x48] sm:$0xff]  }
   0x6   :  { %v249_v12 = vcombine.high %v21_v11, %v21_v11  ;;  %v303_v15 = vld [vmem:[%s403_s1 + $0x8] sm:$0xff]   ;;  %v304_v16 = vld [vmem:[%s403_s1 + $0x40] sm:$0xff]   ;;  %v248_v18 = vcombine.low %v21_v11, %v21_v11 }
   0x7   :  { %271 = vmatpush3.bf16.msra.mxu0 %v293_v3  ;;  %v305_v17 = vld [vmem:[%s403_s1] sm:$0xff]  }
   0x8   :  { %272 = vmatprep.subr.bf16.mxu0 %v294_v4  ;;  %196 = vmatprep.mubr.bf16.mxu0 %v249_v12  ;;  %v247_v20 = vld [vmem:[%s405_s2] ss:$0 sm:$0xff] }
   0x9   :  { %v266_v44 = vld [vmem:[%s406_s3] ss:$0 sm:$0xff] }
   0xa   :  { %v267_v46 = vld [vmem:[%s407_s4] ss:$0 sm:$0xff] }
   0xb   :  { %273 = vmatpush3.bf16.msra.mxu0 %v295_v5 }
   0xc   :  { %274 = vmatprep.subr.bf16.mxu0 %v296_v6 }
   0xf   :  { %275 = vmatpush3.bf16.msra.mxu0 %v297_v7 }
  0x10   :  { %276 = vmatprep.subr.bf16.mxu0 %v298_v8 }
  0x13   :  { %277 = vmatpush3.bf16.msra.mxu0 %v299_v9 }
  0x14   :  { %278 = vmatprep.subr.bf16.mxu0 %v300_v10 }
  0x17   :  { %279 = vmatpush3.bf16.msra.mxu0 %v301_v13 }
  0x18   :  { %280 = vmatprep.subr.bf16.mxu0 %v302_v14 }
  0x1b   :  { %281 = vmatpush3.bf16.msra.mxu0 %v303_v15 }
  0x1c   :  { %282 = vmatprep.subr.bf16.mxu0 %v304_v16 }
  0x1f   :  { %283 = vmatpush3.bf16.msra.mxu0 %v305_v17 }
  0x22   :  { %197 = vmatmul.mubr.bf16.vlgmr.msra.gmra.mxu0 %v248_v18 }
  0xe2   :  { %v284_v19 = vpop.f32.mrf.mxu0 }
  0xe4   :  { %v285_v21 = vpop.f32.mrf.mxu0 }
  0xe5   :  { %v286_v22 = vadd.f32 %v285_v21, %v284_v19 }
  0xe6   :  { %v287_v23 = vpop.f32.mrf.mxu0 }
  0xe7   :  { %v199_v24 = vadd.f32 %v286_v22, %v247_v20 }
  0xe8   :  { %v288_v25 = vpop.f32.mrf.mxu0 }
  0xe9   :  { %v204_v26 = vrot.slane %v199_v24, 4 }
  0xeb   :  { %v205_v27 = vadd.f32 %v204_v26, %v199_v24 }
  0xed   :  { %v206_v28 = vrot.slane %v205_v27, 2 }
  0xef   :  { %v207_v29 = vadd.f32 %v206_v28, %v205_v27 }
  0xf1   :  { %v208_v30 = vrot.slane %v207_v29, 1 }
  0xf3   :  { %v209_v31 = vadd.f32 %v208_v30, %v207_v29 }
  0xf5   :  { %v210_v32 = vmul.f32 0.125, %v209_v31 }
  0xf7   :  { %v211_v33 = vsub.f32 %v199_v24, %v210_v32 }
  0xf9   :  { %v212_v34 = vmul.f32 %v211_v33, %v211_v33 }
  0xfb   :  { %v213_v35 = vrot.slane %v212_v34, 4 }
  0xfd   :  { %v214_v36 = vadd.f32 %v213_v35, %v212_v34 }
  0xff   :  { %v215_v37 = vrot.slane %v214_v36, 2 }
 0x101   :  { %v216_v38 = vadd.f32 %v215_v37, %v214_v36 }
 0x103   :  { %v217_v39 = vrot.slane %v216_v38, 1 }
 0x105   :  { %v218_v40 = vadd.f32 %v217_v39, %v216_v38 }
 0x107   :  { %v219_v41 = vmul.f32 0.125, %v218_v40 }
 0x109   :  { %v220_v42 = vadd.f32 1e-05, %v219_v41 }
 0x10b   :  { %308 = vrsqrt.f32 %v220_v42 }
 0x118   :  { %v309_v43 = vpop.eup %308 }
 0x119   :  { %v222_v45 = vmul.f32 %v309_v43, %v211_v33 }
 0x11b   :  { %v230_v47 = vmul.f32 %v266_v44, %v222_v45 }
 0x11d   :  { %v238_v48 = vadd.f32 %v267_v46, %v230_v47 }
 0x11f   :  { %vm239_vm0 = vcmp.ge.f32.partialorder %v238_v48, 0.0  ;;  %v240_v49 = vmul.f32 0.2, %v238_v48 }
 0x121   :  { %v241_v50 = vsel %vm239_vm0, %v238_v48, %v240_v49 }
 0x122   :  { %242 = vst [vmem:[%s408_s5] sm:$0xff] %v241_v50 }

// kernel: discriminator_forward.7
= control target key start
LH: loop header
LB: loop body
LE: loop exit
PB: predicated region body
PF: predicated region fallthrough
CT: control target
= control target key end

     0   :  { %v510_v22 = vmov 1966171168   ;;  %v105_v24 = vlaneseq  ;;  %s646_s1 = inlined_call_operand.vmem [shape: bf16[512,128], index: 1, kind: input, shape index: {}]   ;;  %s647_s3 = inlined_call_operand.vmem [shape: f32[1,128], index: 3, kind: input, shape index: {}]   ;;  %s648_s4 = inlined_call_operand.vmem [shape: f32[1,128], index: 4, kind: input, shape index: {}]   ;;  %s649_s0 = inlined_call_operand.vmem [shape: bf16[2,512], index: 0, kind: input, shape index: {}]   ;;  %s650_s2 = inlined_call_operand.vmem [shape: f32[1,128], index: 2, kind: input, shape index: {}]   ;;  %s651_s5 = inlined_call_operand.vmem [shape: f32[2,128], index: 5, kind: output, shape index: {}]  }
   0x1   :  { %v478_v0 = vld [vmem:[%s646_s1 + $0x78] sm:$0xff]   ;;  %v482_v4 = vld [vmem:[%s646_s1 + $0x70] sm:$0xff]   ;;  %v486_v8 = vld [vmem:[%s646_s1 + $0x68] sm:$0xff]   ;;  %v103_v23 = vunpack.c.l.s4 %v510_v22 }
   0x2   :  { %v479_v1 = vld [vmem:[%s646_s1 + $0xf8] sm:$0xff]   ;;  %433 = vmatprep.subr.bf16.mxu0 %v478_v0  ;;  %v483_v5 = vld [vmem:[%s646_s1 + $0xf0] sm:$0xff]   ;;  %v487_v9 = vld [vmem:[%s646_s1 + $0xe8] sm:$0xff]   ;;  %v106_v30 = vshrl.u32 %v105_v24, 7 }
   0x3   :  { %v480_v2 = vld [vmem:[%s646_s1 + $0x38] sm:$0xff]   ;;  %455 = vmatprep.subr.bf16.mxu1 %v479_v1  ;;  %v484_v6 = vld [vmem:[%s646_s1 + $0x30] sm:$0xff]   ;;  %v488_v10 = vld [vmem:[%s646_s1 + $0x28] sm:$0xff]   ;;  %v104_v29 = vunpack.c.0.s8 %v103_v23 }
   0x4   :  { %v481_v3 = vld [vmem:[%s646_s1 + $0xb8] sm:$0xff]   ;;  %434 = vmatpush3.bf16.msra.mxu0 %v480_v2  ;;  %v485_v7 = vld [vmem:[%s646_s1 + $0xb0] sm:$0xff]   ;;  %v489_v11 = vld [vmem:[%s646_s1 + $0xa8] sm:$0xff]  }
   0x5   :  { %456 = vmatpush3.bf16.msra.mxu1 %v481_v3  ;;  %435 = vmatprep.subr.bf16.mxu0 %v482_v4  ;;  %v490_v12 = vld [vmem:[%s646_s1 + $0x60] sm:$0xff]   ;;  %v494_v16 = vld [vmem:[%s646_s1 + $0x58] sm:$0xff]   ;;  %v498_v20 = vld [vmem:[%s646_s1 + $0x50] sm:$0xff]   ;;  %v107_v35 = vsub.s32 %v104_v29, %v106_v30 }
   0x6   :  { %457 = vmatprep.subr.bf16.mxu1 %v483_v5  ;;  %v491_v13 = vld [vmem:[%s646_s1 + $0xe0] sm:$0xff]   ;;  %v495_v17 = vld [vmem:[%s646_s1 + $0xd8] sm:$0xff]   ;;  %v499_v21 = vld [vmem:[%s646_s1 + $0xd0] sm:$0xff]  }
   0x7   :  { %v492_v14 = vld [vmem:[%s646_s1 + $0x20] sm:$0xff]   ;;  %v496_v18 = vld [vmem:[%s646_s1 + $0x18] sm:$0xff]   ;;  %v500_v25 = vld [vmem:[%s646_s1 + $0x10] sm:$0xff]  }
   0x8   :  { %436 = vmatpush3.bf16.msra.mxu0 %v484_v6  ;;  %v493_v15 = vld [vmem:[%s646_s1 + $0xa0] sm:$0xff]   ;;  %v497_v19 = vld [vmem:[%s646_s1 + $0x98] sm:$0xff]   ;;  %v501_v26 = vld [vmem:[%s646_s1 + $0x90] sm:$0xff]  }
   0x9   :  { %458 = vmatpush3.bf16.msra.mxu1 %v485_v7  ;;  %437 = vmatprep.subr.bf16.mxu0 %v486_v8  ;;  %v502_v27 = vld [vmem:[%s646_s1 + $0x48] sm:$0xff]   ;;  %v506_v33 = vld [vmem:[%s646_s1 + $0x40] sm:$0xff]  }
   0xa   :  { %459 = vmatprep.subr.bf16.mxu1 %v487_v9  ;;  %v503_v28 = vld [vmem:[%s646_s1 + $0xc8] sm:$0xff]   ;;  %v507_v34 = vld [vmem:[%s646_s1 + $0xc0] sm:$0xff]  }
   0xb   :  { %v504_v31 = vld [vmem:[%s646_s1 + $0x8] sm:$0xff]   ;;  %v508_v36 = vld [vmem:[%s646_s1] sm:$0xff]  }
   0xc   :  { %438 = vmatpush3.bf16.msra.mxu0 %v488_v10  ;;  %v505_v32 = vld [vmem:[%s646_s1 + $0x88] sm:$0xff]   ;;  %v509_v37 = vld [vmem:[%s646_s1 + $0x80] sm:$0xff]  }
   0xd   :  { %460 = vmatpush3.bf16.msra.mxu1 %v489_v11  ;;  %439 = vmatprep.subr.bf16.mxu0 %v490_v12  ;;  %v400_v38 = vld.sshfl [vmem:[%s649_s0] sm:$0x33 pattern:$0x75316420] }
   0xe   :  { %461 = vmatprep.subr.bf16.mxu1 %v491_v13  ;;  %v101_v39 = vcombine.high %v400_v38, %v400_v38  ;;  %v108_v40 = vrot.slane %v400_v38, %v107_v35  ;;  %v399_v46 = vld [vmem:[%s650_s2] ss:$0 sm:$0xff] }
  0x10   :  { %440 = vmatpush3.bf16.msra.mxu0 %v492_v14  ;;  %v115_v41 = vrot.slane %v101_v39, %v107_v35  ;;  %v116_v42 = vcombine.high %v108_v40, %v108_v40 }
  0x11   :  { %462 = vmatpush3.bf16.msra.mxu1 %v493_v15  ;;  %441 = vmatprep.subr.bf16.mxu0 %v494_v16 }
  0x12   :  { %463 = vmatprep.subr.bf16.mxu1 %v495_v17  ;;  %346 = vmatprep.mubr.bf16.mxu0 %v115_v41  ;;  %v117_v43 = vcombine.high %v115_v41, %v115_v41 }
  0x14   :  { %442 = vmatpush3.bf16.msra.mxu0 %v496_v18  ;;  %386 = vmatprep.mubr.bf16.mxu1 %v117_v43 }
  0x15   :  { %464 = vmatpush3.bf16.msra.mxu1 %v497_v19  ;;  %443 = vmatprep.subr.bf16.mxu0 %v498_v20 }
  0x16   :  { %465 = vmatprep.subr.bf16.mxu1 %v499_v21 }
  0x18   :  { %444 = vmatpush3.bf16.msra.mxu0 %v500_v25 }
  0x19   :  { %466 = vmatpush3.bf16.msra.mxu1 %v501_v26  ;;  %445 = vmatprep.subr.bf16.mxu0 %v502_v27 }
  0x1a   :  { %467 = vmatprep.subr.bf16.mxu1 %v503_v28 }
  0x1c   :  { %446 = vmatpush3.bf16.msra.mxu0 %v504_v31 }
  0x1d   :  { %468 = vmatpush3.bf16.msra.mxu1 %v505_v32  ;;  %447 = vmatprep.subr.bf16.mxu0 %v506_v33 }
  0x1e   :  { %469 = vmatprep.subr.bf16.mxu1 %v507_v34 }
  0x20   :  { %448 = vmatpush3.bf16.msra.mxu0 %v508_v36 }
  0x21   :  { %470 = vmatpush3.bf16.msra.mxu1 %v509_v37 }
  0x23   :  { %347 = vmatmul.mubr.bf16.vlgmr.msra.gmra.mxu0 %v108_v40 }
  0x24   :  { %387 = vmatmul.mubr.bf16.vlgmr.msra.gmra.mxu1 %v116_v42 }
  0xe3   :  { %v449_v44 = vpop.f32.mrf.mxu0 }
  0xe4   :  { %v471_v45 = vpop.f32.mrf.mxu1 }
  0xe5   :  { %v450_v47 = vpop.f32.mrf.mxu0 }
  0xe6   :  { %v451_v48 = vadd.f32 %v450_v47, %v449_v44  ;;  %v472_v49 = vpop.f32.mrf.mxu1 }
  0xe7   :  { %v452_v50 = vpop.f32.mrf.mxu0  ;;  %v473_v52 = vadd.f32 %v472_v49, %v471_v45 }
  0xe8   :  { %v349_v51 = vadd.f32 %v451_v48, %v399_v46  ;;  %v474_v53 = vpop.f32.mrf.mxu1 }
  0xe9   :  { %v453_v54 = vpop.f32.mrf.mxu0 }
  0xea   :  { %v389_v55 = vadd.f32 %v473_v52, %v349_v51  ;;  %v475_v56 = vpop.f32.mrf.mxu1 }
  0xec   :  { %394 = vst [vmem:[%s651_s5] sm:$0x3] %v389_v55 }

</bundles_post_ra>
